<compile_context>
chip_gen: v6e
topology: v6e:2x2x1
jax: 0.10.0
libtpu: 0.0.40
codegen_flags: <defaults>
</compile_context>

<pallas_src>
import jax
import jax.numpy as jnp
from jax.experimental import pallas as pl
from jax.experimental.pallas import tpu as pltpu

_NORMALIZE_EPS = 1e-12   # F.normalize default eps (clamp on the norm)
_PDIST_EPS = 1e-6        # nn.PairwiseDistance default eps (added to the diff)


def _euclidean_dist_kernel(x1_ref, o_ref):
    """One batch tile of EuclideanDist.forward.

    The reference computes diff = normalize(x1) - normalize(x1) + eps, so
    diff == eps exactly for every finite row (including all-zero rows, where
    the normalize eps clamp makes a == 0), and is NaN exactly on the lanes
    that are non-finite in x1 (those lanes poison normalize / the subtraction
    in torch as well).  We therefore compute:
      * nan_carrier = sum(x1 - x1) per row  -> 0.0 for finite rows, NaN else
        (float x - x is not folded to 0 by the compiler, per IEEE rules),
      * dist = sqrt(D * eps^2 + nan_carrier) = eps*sqrt(D) or NaN.
    This matches the reference to ulp level (tree-sum of D copies of eps^2 vs
    D*eps^2) and keeps the kernel at ~1 VALU op/element + 1 XLU reduce so it
    stays HBM-bound even at v7x bandwidth.
    """
    x1 = x1_ref[...].astype(jnp.float32)
    d = x1_ref.shape[1]

    # NaN/Inf propagation path (0.0 or NaN per row).
    nan_carrier = jnp.sum(x1 - x1, axis=1, keepdims=True)

    const = jnp.float32(float(d) * (_PDIST_EPS * _PDIST_EPS))   # sum_j eps^2
    dist = jnp.sqrt(const + nan_carrier)                        # eps*sqrt(D) or NaN
    o_ref[...] = jnp.abs(dist).astype(o_ref.dtype)


def _vmem_capacity_bytes() -> int:
    """Physical VMEM per TensorCore; conservative (v7x-sized) fallback."""
    try:
        cap = int(getattr(pltpu.get_tpu_info(), "vmem_capacity_bytes", 0))
        if cap > 0:
            return cap
    except Exception:
        pass
    return 64 * 1024 * 1024


def _budgets(vmem_cap: int) -> tuple[int, int]:
    """Returns (per-pipeline-buffer byte budget, scoped vmem_limit_bytes)."""
    if vmem_cap >= 128 * 1024 * 1024:
        # v5e / v6e: 128 MiB physical; one double-buffered input + tiny output.
        return 24 * 1024 * 1024, 56 * 1024 * 1024
    # v7x (64 MiB per TC) or unknown: stay well under the physical limit.
    return 18 * 1024 * 1024, 44 * 1024 * 1024


def _pick_tile_b(B: int, D: int, itemsize: int, per_buffer_bytes: int) -> int:
    """Largest batch tile that fills the per-buffer budget, subject to:
      * sublane packing multiple (8 for f32, 16 for bf16, 32 for 8-bit),
      * >= 2 grid steps when B spans more than one sublane group, so the
        'parallel' grid axis can be sharded across v7x's two TensorCores."""
    sub = 8 * max(1, 4 // max(itemsize, 1))
    row_bytes = max(D * itemsize, 1)
    tile = per_buffer_bytes // row_bytes
    tile = max(sub, (tile // sub) * sub)
    b_pad = ((B + sub - 1) // sub) * sub
    if b_pad > sub:
        half = ((pl.cdiv(B, 2) + sub - 1) // sub) * sub
        tile = min(tile, half)
    return min(tile, b_pad)


def euclidean_dist(x1: jax.Array, x2: jax.Array) -> jax.Array:
    """Pallas implementation of EuclideanDist.forward for 2-D (B, D) inputs."""
    assert x1.ndim == 2 and x1.shape == x2.shape, "expected matching (B, D) inputs"
    B, D = x1.shape
    itemsize = jnp.dtype(x1.dtype).itemsize

    per_buffer, vmem_limit = _budgets(_vmem_capacity_bytes())
    tile_b = _pick_tile_b(B, D, itemsize, per_buffer)
    grid_b = pl.cdiv(B, tile_b)

    # Escape hatch for very large D: make sure the (tile_b, D) double buffer is
    # covered by the scoped limit.  TODO(synk): for D so large that even an
    # 8-row double buffer exceeds physical VMEM, add a D-tiling grid axis
    # ('arbitrary') with a per-row partial-sum accumulator + pl.when finalize.
    vmem_limit = max(vmem_limit,
                     2 * tile_b * D * itemsize + 4 * tile_b * itemsize + (2 << 20))

    # Mem-bound hint for XLA's scheduler (x2 is never read by the module).
    cost = pl.CostEstimate(
        flops=2 * B * D,              # one subtract + one reduce-add per element
        transcendentals=B,            # one sqrt per row
        bytes_accessed=B * D * itemsize + B * itemsize,
    )

    # NOTE: x2 is intentionally not passed to pallas_call — the reference module
    # never uses it, and streaming it would double HBM read traffic.
    # TODO(synk): flag the x1/x1 normalization bug upstream — with the bug the
    # ideal "kernel" is a constant fill of eps*sqrt(D) (plus NaN rows).
    out = pl.pallas_call(
        _euclidean_dist_kernel,
        out_shape=jax.ShapeDtypeStruct((B, 1), x1.dtype),
        grid_spec=pltpu.PrefetchScalarGridSpec(
            num_scalar_prefetch=0,
            grid=(grid_b,),
            in_specs=[
                pl.BlockSpec((tile_b, D), lambda i: (i, 0)),
            ],
            out_specs=pl.BlockSpec((tile_b, 1), lambda i: (i, 0)),
        ),
        compiler_params=pltpu.CompilerParams(
            dimension_semantics=("parallel",),   # rows independent -> megacore
            vmem_limit_bytes=int(vmem_limit),
        ),
        cost_estimate=cost,
    )(x1)

    # PyTorch PairwiseDistance with keepdim=False returns shape (B,)
    return out.reshape(B)


def _reference(x1, x2):
    # Pure-JAX mirror of the PyTorch module (including its x1/x1 bug).
    norm = jnp.sqrt(jnp.sum(x1 * x1, axis=1, keepdims=True))
    denom = jnp.maximum(norm, _NORMALIZE_EPS)
    a = x1 / denom
    b = x1 / denom                    # reference bug: x2 never used
    diff = a - b + _PDIST_EPS
    return jnp.abs(jnp.sqrt(jnp.sum(diff * diff, axis=1)))


if __name__ == "__main__":
    key = jax.random.PRNGKey(0)
    k1, k2 = jax.random.split(key)

    # Small, deterministic inputs consistent with the module's (B, D) contract.
    B, D = 8, 32
    x1 = jax.random.normal(k1, (B, D), dtype=jnp.float32)
    x2 = jax.random.normal(k2, (B, D), dtype=jnp.float32)

    dist = euclidean_dist(x1, x2)
    jax.block_until_ready(dist)
    ref = _reference(x1, x2)
    assert dist.shape == (B,)
    assert jnp.allclose(dist, ref, rtol=1e-5, atol=1e-9), (dist, ref)

    # Second case: ragged batch (partial last block, grid_b >= 2) plus a zero
    # row and non-finite rows to lock in the NaN-propagation semantics.
    B2, D2 = 40, 128
    y1 = jax.random.normal(k1, (B2, D2), dtype=jnp.float32)
    y1 = y1.at[3].set(0.0)
    y1 = y1.at[17, 5].set(jnp.inf)
    y1 = y1.at[29, 0].set(jnp.nan)
    y2 = jax.random.normal(k2, (B2, D2), dtype=jnp.float32)

    d2 = euclidean_dist(y1, y2)
    jax.block_until_ready(d2)
    r2 = _reference(y1, y2)
    assert d2.shape == (B2,)
    assert jnp.allclose(d2, r2, rtol=1e-5, atol=1e-9, equal_nan=True), (d2, r2)

    print("KERNEL_OK")
</pallas_src>

<mosaic_0001>
module attributes {stable_mosaic.version = 11 : i64} {
  func.func @_euclidean_dist_kernel(%arg0: i32, %arg1: memref<8x32xf32, #tpu.memory_space<vmem>>, %arg2: memref<8x1xf32, #tpu.memory_space<vmem>>) attributes {dimension_semantics = [#tpu.dimension_semantics<parallel>], iteration_bounds = array<i64: 1>, scalar_prefetch = 0 : i64, scratch_operands = 0 : i64, tpu.core_type = #tpu.core_type<tc>, window_params = [{transform_indices = @transform_0, window_bounds = array<i64: 8, 32>}, {transform_indices = @transform_1, window_bounds = array<i64: 8, 1>}]} {
    %c0 = arith.constant 0 : index
    %c0_0 = arith.constant 0 : index
    %0 = vector.load %arg1[%c0, %c0_0] : memref<8x32xf32, #tpu.memory_space<vmem>>, vector<8x32xf32>
    %1 = arith.subf %0, %0 : vector<8x32xf32>
    %cst = arith.constant dense<0.000000e+00> : vector<8xf32>
    %2 = vector.multi_reduction <add>, %1, %cst [1] : vector<8x32xf32> to vector<8xf32>
    %3 = vector.shape_cast %2 : vector<8xf32> to vector<8x1xf32>
    %cst_1 = arith.constant 3.200000e-11 : f32
    %4 = vector.broadcast %cst_1 : f32 to vector<8x1xf32>
    %5 = arith.addf %4, %3 : vector<8x1xf32>
    %6 = math.sqrt %5 : vector<8x1xf32>
    %7 = math.absf %6 : vector<8x1xf32>
    %c0_2 = arith.constant 0 : index
    %c0_3 = arith.constant 0 : index
    %8 = vector.load %arg2[%c0_2, %c0_3] : memref<8x1xf32, #tpu.memory_space<vmem>>, vector<8x1xf32>
    tpu.vector_store %arg2[%c0_2, %c0_3], %7 {strides = array<i32>} : memref<8x1xf32, #tpu.memory_space<vmem>>, vector<8x1xf32>,
    return
  }
  func.func @transform_0(%arg0: i32) -> (i32, i32) {
    %c0_i32 = arith.constant 0 : i32
    %c0_i32_0 = arith.constant 0 : i32
    return %arg0, %c0_i32 : i32, i32
  }
  func.func @transform_1(%arg0: i32) -> (i32, i32) {
    %c0_i32 = arith.constant 0 : i32
    %c0_i32_0 = arith.constant 0 : i32
    return %arg0, %c0_i32 : i32, i32
  }
}

</mosaic_0001>

<bundles_post_ra>
// kernel: tpu_custom_call.1
= control target key start
LH: loop header
LB: loop body
LE: loop exit
PB: predicated region body
PF: predicated region fallthrough
CT: control target
= control target key end

     0   :  { %6 = vsyncpa [#allocation3], 0  ;;  %s67_s6 = smov [#allocation2]   ;;  %s84_s0 = inlined_call_operand.hbm [shape: f32[8,32], index: 0, kind: input, shape index: {}]   ;;  %s85_s1 = inlined_call_operand.vmem [shape: f32[8,1], index: 1, kind: output, shape index: {}]  }
   0x1   :  { %s13_s7 = sshll.u32 %s67_s6, 4  ;;  %s14_s7 = int_to_ptr.vmem [resolvable:$true] %s13_s7 }
   0x2   :  { %s53_s8 = scalar_lea.vmem %s14_s7, 128  ;;  %p58_p1 = scmp.lt.s32.totalorder %s14_s7, %s14_s7 }
   0x3   :  { %p54_p0 = scmp.ne.s32.totalorder %s14_s7, %s53_s8  ;;  %p59_p2 = scmp.lt.s32.totalorder %s53_s8, %s53_s8 }
   0x5   :  { %p60_p3 = por %p59_p2, %p58_p1 }
   0x7   :  { %p61_p4 = pnand %p60_p3, %p54_p0 }
   0x9   :  { %64 = shalt.err (!%p61_p4)
}
   0xa   :  { %16 = dma.hbm_to_vmem [thread:$0]  %s84_s0, 128, %s14_s7, [#allocation3]  }
   0xb   :  { %65 = dma.done.wait [#allocation3], 128  }
   0xc   :  { %66 = vsyncadd [#allocation3], 4294967168  ;;  %v20_v0 = vld [vmem:[#allocation2] sm:$0xff]  ;;  %vm22_vm0 = vcmask 261120   ;;  %vm35_vm3 = vcmask 7168  }
   0xd   :  { %v21_v1 = vsub.f32 %v20_v0, %v20_v0 }
   0xf   :  { %v23_v2 = vsel %vm22_vm0, %v21_v1, 0.0 }
  0x10   :  { %24 = vadd.xlane.f32.xlu0 %v23_v2 }
  0x99   :  { %v25_v3 = vpop.xlane.xlu0 %24 }
  0x9a   :  { %v26_v4 = vadd.f32 3.2e-11, %v25_v3 }
  0x9c   :  { %43 = vrsqrt.f32 %v26_v4  ;;  %vm29_vm1 = vcmp.eq.f32.partialorder %v26_v4, inf  ;;  %v32_v7 = vand.u32 2147483648, %v26_v4  ;;  %vm31_vm2 = vcmp.eq.f32.partialorder %v26_v4, 0.0 }
  0xa9   :  { %v44_v5 = vpop.eup %43 }
  0xaa   :  { %v28_v6 = vmul.f32 %v44_v5, %v26_v4 }
  0xac   :  { %v30_v8 = vsel %vm29_vm1, %v26_v4, %v28_v6 }
  0xad   :  { %v33_v9 = vsel %vm31_vm2, %v32_v7, %v30_v8 }
  0xae   :  { %v34_v10 = vand.u32 2147483647, %v33_v9 }
  0xb0   :  { %36 = vst.msk [vmem:[%s85_s1] sm:$0xff] %vm35_vm3, %v34_v10 }
  0xb1   :  { %41 = vsyncpa [#allocation3], 1 }

</bundles_post_ra>
